<compile_context>
chip_gen: v7x
topology: tpu7x:2x2x1
jax: 0.10.0
libtpu: 0.0.40
codegen_flags: <defaults>
</compile_context>

<pallas_src>
import numpy as np
import jax
import jax.numpy as jnp
from jax.experimental import pallas as pl
from jax.experimental.pallas import tpu as pltpu


def _round_up(x, m):
    return ((x + m - 1) // m) * m


# ----------------------------------------------------------------------------
# Pallas kernels
# ----------------------------------------------------------------------------
def _make_agg_kernel(n_dir, d_out, inv_deg, use_bf16):
    """Fused multi-direction mean aggregator.

    refs layout: for each direction d:
        self_ref [T, D_in], neigh_ref [T, deg, D_in],
        w_self_ref [D_in, D_out], w_neigh_ref [D_in, D_out]
    followed by out_ref [T, 2 * n_dir * D_out]
        (columns: [d0_self | d0_neigh | d1_self | d1_neigh | ...]).
    """

    def kernel(*refs):
        out_ref = refs[-1]
        for d in range(n_dir):
            self_ref, neigh_ref, ws_ref, wn_ref = refs[4 * d: 4 * d + 4]
            x_self = self_ref[...]                              # [T, D_in]
            # sum (not mean): scale by 1/deg after the (linear) matmul.
            neigh_sum = jnp.sum(neigh_ref[...], axis=1)          # [T, D_in]
            w_s = ws_ref[...]
            w_n = wn_ref[...]
            if use_bf16:
                x_self = x_self.astype(jnp.bfloat16)
                neigh_sum = neigh_sum.astype(jnp.bfloat16)
                w_s = w_s.astype(jnp.bfloat16)
                w_n = w_n.astype(jnp.bfloat16)
            h_self = jnp.dot(x_self, w_s, preferred_element_type=jnp.float32)
            h_neigh = jnp.dot(neigh_sum, w_n,
                              preferred_element_type=jnp.float32) * inv_deg
            base = 2 * d * d_out
            # Direct slice stores into the lane-dense output slab.
            out_ref[:, base:base + d_out] = jnp.maximum(h_self, 0.0)
            out_ref[:, base + d_out:base + 2 * d_out] = jnp.maximum(h_neigh, 0.0)

    return kernel


def mean_aggregator(groups, *, tile_n=256, use_bf16=True):
    """groups: list of (self_h [N,Din], neigh_h [N,deg,Din], w_self, w_neigh).

    Returns [N, 2 * len(groups) * D_out] f32 with columns
    [g0_self | g0_neigh | g1_self | g1_neigh | ...].
    """
    n_dir = len(groups)
    n, d_in = groups[0][0].shape
    deg = groups[0][1].shape[1]
    d_out = groups[0][2].shape[1]

    tile_n = min(_round_up(n, 8), tile_n)
    n_pad = _round_up(n, tile_n)

    args = []
    for (self_h, neigh_h, w_s, w_n) in groups:
        if n_pad != n:
            self_h = jnp.pad(self_h, ((0, n_pad - n), (0, 0)))
            neigh_h = jnp.pad(neigh_h, ((0, n_pad - n), (0, 0), (0, 0)))
        args += [self_h, neigh_h, w_s, w_n]

    row_spec = pl.BlockSpec((tile_n, d_in), lambda i: (i, 0))
    neigh_spec = pl.BlockSpec((tile_n, deg, d_in), lambda i: (i, 0, 0))
    w_spec = pl.BlockSpec((d_in, d_out), lambda i: (0, 0))
    in_specs = [row_spec, neigh_spec, w_spec, w_spec] * n_dir

    out_cols = 2 * n_dir * d_out
    out_spec = pl.BlockSpec((tile_n, out_cols), lambda i: (i, 0))

    flops = n_dir * (4 * n_pad * d_in * d_out + n_pad * deg * d_in)
    bytes_acc = 4 * (n_dir * (n_pad * d_in * (1 + deg) + 2 * d_in * d_out)
                     + n_pad * out_cols)

    out = pl.pallas_call(
        _make_agg_kernel(n_dir, d_out, 1.0 / deg, use_bf16),
        out_shape=jax.ShapeDtypeStruct((n_pad, out_cols), jnp.float32),
        grid=(n_pad // tile_n,),
        in_specs=in_specs,
        out_specs=out_spec,
        compiler_params=pltpu.CompilerParams(
            dimension_semantics=("parallel",),
            vmem_limit_bytes=32 * 1024 * 1024),
        cost_estimate=pl.CostEstimate(
            flops=flops, transcendentals=0, bytes_accessed=bytes_acc),
    )(*args)
    return out[:n] if n_pad != n else out


def _relu_maxpool_kernel(h_ref, h_out_ref, pool_ref):
    """Per (graph, node-tile): relu, stream out, max-accumulate pool.

    h_ref / h_out_ref: [1, TILE_M, C]; pool_ref: [1, 1, C] (accumulator block).
    """
    t = pl.program_id(1)
    h = jnp.maximum(h_ref[...], 0.0)
    h_out_ref[...] = h
    tile_max = jnp.max(h, axis=1, keepdims=True)   # [1, 1, C]

    @pl.when(t == 0)
    def _():
        pool_ref[...] = tile_max

    @pl.when(t > 0)
    def _():
        pool_ref[...] = jnp.maximum(pool_ref[...], tile_max)


def relu_maxpool(hidden, *, tile_m):
    """hidden: [B, M, C] with M a multiple of tile_m (padded with -100)."""
    b, m, c = hidden.shape
    grid = (b, m // tile_m)
    h_spec = pl.BlockSpec((1, tile_m, c), lambda i, t: (i, t, 0))
    pool_spec = pl.BlockSpec((1, 1, c), lambda i, t: (i, 0, 0))

    flops = 2 * b * m * c
    bytes_acc = 4 * (2 * b * m * c + b * c)

    h_out, pool = pl.pallas_call(
        _relu_maxpool_kernel,
        out_shape=(jax.ShapeDtypeStruct((b, m, c), jnp.float32),
                   jax.ShapeDtypeStruct((b, 1, c), jnp.float32)),
        grid=grid,
        in_specs=[h_spec],
        out_specs=(h_spec, pool_spec),
        compiler_params=pltpu.CompilerParams(
            dimension_semantics=("parallel", "arbitrary"),
            vmem_limit_bytes=32 * 1024 * 1024),
        cost_estimate=pl.CostEstimate(
            flops=flops, transcendentals=0, bytes_accessed=bytes_acc),
    )(hidden)
    return h_out, pool[:, 0, :]


# ----------------------------------------------------------------------------
# Parameter construction (deterministic, synthetic)
# ----------------------------------------------------------------------------
def init_params(key, vocab_size, hidden_dim, hop_size, direction):
    params = {"fw": [], "bw": []}
    k_emb, key = jax.random.split(key)
    params["embedding"] = (
        jax.random.normal(k_emb, (vocab_size + 1, hidden_dim), dtype=jnp.float32) * 0.1
    )
    n_aggs = min(hop_size, 7)          # aggregators are reused beyond hop 6
    for hop in range(n_aggs):
        d_in = hidden_dim if hop == 0 else 2 * hidden_dim
        k1, k2, k3, k4, key = jax.random.split(key, 5)
        params["fw"].append((
            jax.random.normal(k1, (d_in, hidden_dim), dtype=jnp.float32) * 0.1,
            jax.random.normal(k2, (d_in, hidden_dim), dtype=jnp.float32) * 0.1,
        ))
        if direction == "bi":
            params["bw"].append((
                jax.random.normal(k3, (d_in, hidden_dim), dtype=jnp.float32) * 0.1,
                jax.random.normal(k4, (d_in, hidden_dim), dtype=jnp.float32) * 0.1,
            ))
    return params


# ----------------------------------------------------------------------------
# Encoder forward (glue in JAX/XLA, hot path in Pallas)
# ----------------------------------------------------------------------------
def encoder_forward(params, fw_adjs, bw_adjs, features, num_nodes,
                    hop_size, hidden_dim, direction="bi",
                    tile_n=256, tile_m=128, use_bf16=True):
    # Embedding lookup (glue).
    embedded = jnp.take(params["embedding"], features, axis=0)   # [N+1, D]
    n_total = fw_adjs.shape[0]                                   # N

    # Reference passes (N+1)-row embedded as hop-0 self vectors; use first N.
    fw_hidden = embedded[:n_total]
    bw_hidden = embedded[:n_total]

    # TODO(synk): neighbor gather (table[adjs]) stays in XLA; an in-kernel
    # scalar-prefetched DMA gather would avoid materializing [N, deg, D] in HBM.
    for hop in range(hop_size):
        agg_idx = min(hop, 6)
        w_self_fw, w_neigh_fw = params["fw"][agg_idx]
        if hop == 0:
            # pad index N is in-bounds for `embedded` -> embedding of token 0,
            # matching embedded_node_rep[fw_adjs] in the reference.
            neigh_fw = jnp.take(embedded, fw_adjs, axis=0)                 # [N, deg, D]
        else:
            # matches torch.cat([hidden, zeros(1 row)])[adjs]: OOB index -> 0.
            neigh_fw = jnp.take(fw_hidden, fw_adjs, axis=0,
                                mode="fill", fill_value=0.0)               # [N, deg, 2D]
        groups = [(fw_hidden, neigh_fw, w_self_fw, w_neigh_fw)]

        if direction == "bi":
            w_self_bw, w_neigh_bw = params["bw"][agg_idx]
            if hop == 0:
                neigh_bw = jnp.take(embedded, bw_adjs, axis=0)
            else:
                neigh_bw = jnp.take(bw_hidden, bw_adjs, axis=0,
                                    mode="fill", fill_value=0.0)
            groups.append((bw_hidden, neigh_bw, w_self_bw, w_neigh_bw))

        agg_out = mean_aggregator(groups, tile_n=tile_n, use_bf16=use_bf16)
        if direction == "bi":
            fw_hidden = agg_out[:, :2 * hidden_dim]
            bw_hidden = agg_out[:, 2 * hidden_dim:]
        else:
            fw_hidden = agg_out

    if direction == "bi":
        node_repr = jnp.concatenate([fw_hidden, bw_hidden], axis=1)   # [N, 4D]
    else:
        node_repr = fw_hidden                                         # [N, 2D]

    # pad_sequence(batch_first=True, padding_value=-100); num_nodes is static.
    max_n = max(num_nodes)
    tile_m = min(_round_up(max_n, 8), tile_m)
    max_n_pad = _round_up(max_n, tile_m)
    chunks, start = [], 0
    for n in num_nodes:
        c = node_repr[start:start + n]
        chunks.append(jnp.pad(c, ((0, max_n_pad - n), (0, 0)),
                              constant_values=-100.0))
        start += n
    hidden_padded = jnp.stack(chunks, axis=0)                     # [B, maxN_pad, C]

    # relu + max-pool over node axis (Pallas, tiled + accumulated).
    h_full, pooled = relu_maxpool(hidden_padded, tile_m=tile_m)
    hidden = h_full[:, :max_n, :]                                 # [B, maxN, C]

    out_dim = (4 if direction == "bi" else 2) * hidden_dim
    graph_embedding = pooled.reshape(-1, out_dim)
    return hidden, (graph_embedding, graph_embedding)


# ----------------------------------------------------------------------------
if __name__ == "__main__":
    key = jax.random.PRNGKey(0)
    vocab_size = 10
    hidden_dim = 32            # feature_embedding_dim == hidden_layer_dim
    hop_size = 2
    direction = "bi"
    num_nodes = [5, 3]         # two graphs in the batch
    n_total = sum(num_nodes)   # 8
    max_degree = 4

    k_feat, k_fw, k_bw, k_par = jax.random.split(key, 4)
    # features: ops in [3, 7], trailing padding entry = 0
    features = jnp.concatenate([
        jax.random.randint(k_feat, (n_total,), 3, 8),
        jnp.zeros((1,), dtype=jnp.int32),
    ]).astype(jnp.int32)                                          # [N+1]
    # adjacency: global node indices in [0, N]; index N == padding neighbor
    fw_adjs = jax.random.randint(k_fw, (n_total, max_degree), 0,
                                 n_total + 1).astype(jnp.int32)
    bw_adjs = jax.random.randint(k_bw, (n_total, max_degree), 0,
                                 n_total + 1).astype(jnp.int32)

    params = init_params(k_par, vocab_size, hidden_dim, hop_size, direction)

    hidden, (g_c, g_h) = encoder_forward(
        params, fw_adjs, bw_adjs, features, num_nodes,
        hop_size=hop_size, hidden_dim=hidden_dim, direction=direction)

    jax.block_until_ready(hidden)
    jax.block_until_ready(g_c)
    jax.block_until_ready(g_h)

    assert hidden.shape == (2, max(num_nodes), 4 * hidden_dim)
    assert g_c.shape == (2, 4 * hidden_dim)
    # TODO(synk): original module never defines MeanAggregator; standard
    # graph2seq mean aggregator (concat=True, bias-free, ReLU) is assumed.
    print("KERNEL_OK")
</pallas_src>

<mosaic_0001>
module attributes {stable_mosaic.version = 11 : i64} {
  func.func @kernel(%arg0: i32, %arg1: memref<8x32xf32, #tpu.memory_space<vmem>>, %arg2: memref<8x4x32xf32, #tpu.memory_space<vmem>>, %arg3: memref<32x32xf32, #tpu.memory_space<vmem>>, %arg4: memref<32x32xf32, #tpu.memory_space<vmem>>, %arg5: memref<8x32xf32, #tpu.memory_space<vmem>>, %arg6: memref<8x4x32xf32, #tpu.memory_space<vmem>>, %arg7: memref<32x32xf32, #tpu.memory_space<vmem>>, %arg8: memref<32x32xf32, #tpu.memory_space<vmem>>, %arg9: memref<8x128xf32, #tpu.memory_space<vmem>>) attributes {dimension_semantics = [#tpu.dimension_semantics<parallel>], iteration_bounds = array<i64: 1>, scalar_prefetch = 0 : i64, scratch_operands = 0 : i64, tpu.core_type = #tpu.core_type<tc>, window_params = [{transform_indices = @transform_0, window_bounds = array<i64: 8, 32>}, {transform_indices = @transform_1, window_bounds = array<i64: 8, 4, 32>}, {pipeline_mode = #tpu.pipeline_mode<synchronous>, transform_indices = @transform_2, window_bounds = array<i64: 32, 32>}, {pipeline_mode = #tpu.pipeline_mode<synchronous>, transform_indices = @transform_3, window_bounds = array<i64: 32, 32>}, {transform_indices = @transform_4, window_bounds = array<i64: 8, 32>}, {transform_indices = @transform_5, window_bounds = array<i64: 8, 4, 32>}, {pipeline_mode = #tpu.pipeline_mode<synchronous>, transform_indices = @transform_6, window_bounds = array<i64: 32, 32>}, {pipeline_mode = #tpu.pipeline_mode<synchronous>, transform_indices = @transform_7, window_bounds = array<i64: 32, 32>}, {transform_indices = @transform_8, window_bounds = array<i64: 8, 128>}]} {
    %c0 = arith.constant 0 : index
    %c0_0 = arith.constant 0 : index
    %0 = vector.load %arg1[%c0, %c0_0] : memref<8x32xf32, #tpu.memory_space<vmem>>, vector<8x32xf32>
    %c0_1 = arith.constant 0 : index
    %c0_2 = arith.constant 0 : index
    %c0_3 = arith.constant 0 : index
    %1 = vector.load %arg2[%c0_1, %c0_2, %c0_3] : memref<8x4x32xf32, #tpu.memory_space<vmem>>, vector<8x4x32xf32>
    %cst = arith.constant dense<0.000000e+00> : vector<8x32xf32>
    %2 = vector.multi_reduction <add>, %1, %cst [1] : vector<8x4x32xf32> to vector<8x32xf32>
    %c0_4 = arith.constant 0 : index
    %c0_5 = arith.constant 0 : index
    %3 = vector.load %arg3[%c0_4, %c0_5] : memref<32x32xf32, #tpu.memory_space<vmem>>, vector<32x32xf32>
    %c0_6 = arith.constant 0 : index
    %c0_7 = arith.constant 0 : index
    %4 = vector.load %arg4[%c0_6, %c0_7] : memref<32x32xf32, #tpu.memory_space<vmem>>, vector<32x32xf32>
    %5 = arith.truncf %0 : vector<8x32xf32> to vector<8x32xbf16>
    %6 = arith.truncf %2 : vector<8x32xf32> to vector<8x32xbf16>
    %7 = arith.truncf %3 : vector<32x32xf32> to vector<32x32xbf16>
    %8 = arith.truncf %4 : vector<32x32xf32> to vector<32x32xbf16>
    %cst_8 = arith.constant dense<0.000000e+00> : vector<8x32xf32>
    %9 = tpu.matmul %5, %7, %cst_8 {dimension_numbers = #tpu.dot_dimension_numbers<[1], [0], [0], [1], [0, 0, 1, 1], [], []>} : vector<8x32xbf16>, vector<32x32xbf16>, vector<8x32xf32> -> vector<8x32xf32>
    %cst_9 = arith.constant dense<0.000000e+00> : vector<8x32xf32>
    %10 = tpu.matmul %6, %8, %cst_9 {dimension_numbers = #tpu.dot_dimension_numbers<[1], [0], [0], [1], [0, 0, 1, 1], [], []>} : vector<8x32xbf16>, vector<32x32xbf16>, vector<8x32xf32> -> vector<8x32xf32>
    %cst_10 = arith.constant 2.500000e-01 : f32
    %11 = vector.broadcast %cst_10 : f32 to vector<8x32xf32>
    %12 = arith.mulf %10, %11 : vector<8x32xf32>
    %cst_11 = arith.constant 0.000000e+00 : f32
    %13 = vector.broadcast %cst_11 : f32 to vector<8x32xf32>
    %14 = arith.maximumf %9, %13 : vector<8x32xf32>
    %c0_12 = arith.constant 0 : index
    %c0_13 = arith.constant 0 : index
    %15 = vector.load %arg9[%c0_12, %c0_13] : memref<8x128xf32, #tpu.memory_space<vmem>>, vector<8x32xf32>
    tpu.vector_store %arg9[%c0_12, %c0_13], %14 {strides = array<i32>} : memref<8x128xf32, #tpu.memory_space<vmem>>, vector<8x32xf32>,
    %cst_14 = arith.constant 0.000000e+00 : f32
    %16 = vector.broadcast %cst_14 : f32 to vector<8x32xf32>
    %17 = arith.maximumf %12, %16 : vector<8x32xf32>
    %c0_15 = arith.constant 0 : index
    %c32 = arith.constant 32 : index
    %18 = vector.load %arg9[%c0_15, %c32] : memref<8x128xf32, #tpu.memory_space<vmem>>, vector<8x32xf32>
    tpu.vector_store %arg9[%c0_15, %c32], %17 {strides = array<i32>} : memref<8x128xf32, #tpu.memory_space<vmem>>, vector<8x32xf32>,
    %c0_16 = arith.constant 0 : index
    %c0_17 = arith.constant 0 : index
    %19 = vector.load %arg5[%c0_16, %c0_17] : memref<8x32xf32, #tpu.memory_space<vmem>>, vector<8x32xf32>
    %c0_18 = arith.constant 0 : index
    %c0_19 = arith.constant 0 : index
    %c0_20 = arith.constant 0 : index
    %20 = vector.load %arg6[%c0_18, %c0_19, %c0_20] : memref<8x4x32xf32, #tpu.memory_space<vmem>>, vector<8x4x32xf32>
    %cst_21 = arith.constant dense<0.000000e+00> : vector<8x32xf32>
    %21 = vector.multi_reduction <add>, %20, %cst_21 [1] : vector<8x4x32xf32> to vector<8x32xf32>
    %c0_22 = arith.constant 0 : index
    %c0_23 = arith.constant 0 : index
    %22 = vector.load %arg7[%c0_22, %c0_23] : memref<32x32xf32, #tpu.memory_space<vmem>>, vector<32x32xf32>
    %c0_24 = arith.constant 0 : index
    %c0_25 = arith.constant 0 : index
    %23 = vector.load %arg8[%c0_24, %c0_25] : memref<32x32xf32, #tpu.memory_space<vmem>>, vector<32x32xf32>
    %24 = arith.truncf %19 : vector<8x32xf32> to vector<8x32xbf16>
    %25 = arith.truncf %21 : vector<8x32xf32> to vector<8x32xbf16>
    %26 = arith.truncf %22 : vector<32x32xf32> to vector<32x32xbf16>
    %27 = arith.truncf %23 : vector<32x32xf32> to vector<32x32xbf16>
    %cst_26 = arith.constant dense<0.000000e+00> : vector<8x32xf32>
    %28 = tpu.matmul %24, %26, %cst_26 {dimension_numbers = #tpu.dot_dimension_numbers<[1], [0], [0], [1], [0, 0, 1, 1], [], []>} : vector<8x32xbf16>, vector<32x32xbf16>, vector<8x32xf32> -> vector<8x32xf32>
    %cst_27 = arith.constant dense<0.000000e+00> : vector<8x32xf32>
    %29 = tpu.matmul %25, %27, %cst_27 {dimension_numbers = #tpu.dot_dimension_numbers<[1], [0], [0], [1], [0, 0, 1, 1], [], []>} : vector<8x32xbf16>, vector<32x32xbf16>, vector<8x32xf32> -> vector<8x32xf32>
    %cst_28 = arith.constant 2.500000e-01 : f32
    %30 = vector.broadcast %cst_28 : f32 to vector<8x32xf32>
    %31 = arith.mulf %29, %30 : vector<8x32xf32>
    %cst_29 = arith.constant 0.000000e+00 : f32
    %32 = vector.broadcast %cst_29 : f32 to vector<8x32xf32>
    %33 = arith.maximumf %28, %32 : vector<8x32xf32>
    %c0_30 = arith.constant 0 : index
    %c64 = arith.constant 64 : index
    %34 = vector.load %arg9[%c0_30, %c64] : memref<8x128xf32, #tpu.memory_space<vmem>>, vector<8x32xf32>
    tpu.vector_store %arg9[%c0_30, %c64], %33 {strides = array<i32>} : memref<8x128xf32, #tpu.memory_space<vmem>>, vector<8x32xf32>,
    %cst_31 = arith.constant 0.000000e+00 : f32
    %35 = vector.broadcast %cst_31 : f32 to vector<8x32xf32>
    %36 = arith.maximumf %31, %35 : vector<8x32xf32>
    %c0_32 = arith.constant 0 : index
    %c96 = arith.constant 96 : index
    %37 = vector.load %arg9[%c0_32, %c96] : memref<8x128xf32, #tpu.memory_space<vmem>>, vector<8x32xf32>
    tpu.vector_store %arg9[%c0_32, %c96], %36 {strides = array<i32>} : memref<8x128xf32, #tpu.memory_space<vmem>>, vector<8x32xf32>,
    return
  }
  func.func @transform_0(%arg0: i32) -> (i32, i32) {
    %c0_i32 = arith.constant 0 : i32
    %c0_i32_0 = arith.constant 0 : i32
    return %arg0, %c0_i32 : i32, i32
  }
  func.func @transform_1(%arg0: i32) -> (i32, i32, i32) {
    %c0_i32 = arith.constant 0 : i32
    %c0_i32_0 = arith.constant 0 : i32
    %c0_i32_1 = arith.constant 0 : i32
    return %arg0, %c0_i32, %c0_i32_0 : i32, i32, i32
  }
  func.func @transform_2(%arg0: i32) -> (i32, i32) {
    %c0_i32 = arith.constant 0 : i32
    %c0_i32_0 = arith.constant 0 : i32
    %c0_i32_1 = arith.constant 0 : i32
    return %c0_i32, %c0_i32_0 : i32, i32
  }
  func.func @transform_3(%arg0: i32) -> (i32, i32) {
    %c0_i32 = arith.constant 0 : i32
    %c0_i32_0 = arith.constant 0 : i32
    %c0_i32_1 = arith.constant 0 : i32
    return %c0_i32, %c0_i32_0 : i32, i32
  }
  func.func @transform_4(%arg0: i32) -> (i32, i32) {
    %c0_i32 = arith.constant 0 : i32
    %c0_i32_0 = arith.constant 0 : i32
    return %arg0, %c0_i32 : i32, i32
  }
  func.func @transform_5(%arg0: i32) -> (i32, i32, i32) {
    %c0_i32 = arith.constant 0 : i32
    %c0_i32_0 = arith.constant 0 : i32
    %c0_i32_1 = arith.constant 0 : i32
    return %arg0, %c0_i32, %c0_i32_0 : i32, i32, i32
  }
  func.func @transform_6(%arg0: i32) -> (i32, i32) {
    %c0_i32 = arith.constant 0 : i32
    %c0_i32_0 = arith.constant 0 : i32
    %c0_i32_1 = arith.constant 0 : i32
    return %c0_i32, %c0_i32_0 : i32, i32
  }
  func.func @transform_7(%arg0: i32) -> (i32, i32) {
    %c0_i32 = arith.constant 0 : i32
    %c0_i32_0 = arith.constant 0 : i32
    %c0_i32_1 = arith.constant 0 : i32
    return %c0_i32, %c0_i32_0 : i32, i32
  }
  func.func @transform_8(%arg0: i32) -> (i32, i32) {
    %c0_i32 = arith.constant 0 : i32
    %c0_i32_0 = arith.constant 0 : i32
    return %arg0, %c0_i32 : i32, i32
  }
}

</mosaic_0001>

<bundles_post_ra>
// kernel: tpu_custom_call.1
= control target key start
LH: loop header
LB: loop body
LE: loop exit
PB: predicated region body
PF: predicated region fallthrough
CT: control target
= control target key end

     0   :  { %13 = vsyncpa [#allocation3], 0  ;;  %s1063_s0 = inlined_call_operand.hbm [shape: f32[8,32], index: 0, kind: input, shape index: {}]   ;;  %s1064_s1 = inlined_call_operand.hbm [shape: f32[8,4,32], index: 1, kind: input, shape index: {}]   ;;  %s1065_s2 = inlined_call_operand.hbm [shape: f32[32,32], index: 2, kind: input, shape index: {}]   ;;  %s1066_s3 = inlined_call_operand.hbm [shape: f32[32,32], index: 3, kind: input, shape index: {}]   ;;  %s1067_s4 = inlined_call_operand.vmem [shape: f32[8,32], index: 4, kind: input, shape index: {}]   ;;  %s1068_s5 = inlined_call_operand.hbm [shape: f32[8,4,32], index: 5, kind: input, shape index: {}]   ;;  %s1069_s6 = inlined_call_operand.hbm [shape: f32[32,32], index: 6, kind: input, shape index: {}]   ;;  %s1070_s7 = inlined_call_operand.hbm [shape: f32[32,32], index: 7, kind: input, shape index: {}]   ;;  %s1071_s8 = inlined_call_operand.hbm [shape: f32[8,128], index: 8, kind: output, shape index: {}]  }
   0x1   :  { %14 = vsyncpa [#allocation6], 0 }
   0x2   :  { %15 = vsyncpa [#allocation9], 0 }
   0x3   :  { %16 = vsyncpa [#allocation12], 0 }
   0x4   :  { %17 = vsyncpa [#allocation4], 0  ;;  %s818_s27 = smov [#allocation5]   ;;  %s632_s9 = scalar_lea.hbm %s1064_s1, 512 }
   0x5   :  { %s33_s28 = sshll.u32 %s818_s27, 4  ;;  %p633_p0 = scmp.ne.s32.totalorder %s1064_s1, %s632_s9  ;;  %s34_s28 = int_to_ptr.vmem [resolvable:$true] %s33_s28 }
   0x6   :  { %p636_p1 = scmp.lt.u32.totalorder %s632_s9, %s1064_s1 }
   0x8   :  { %p638_p2 = pnand %p636_p1, %p633_p0 }
   0xa   :  { %641 = shalt.err (!%p638_p2)
}
   0xb   :  { %s642_s14 = scalar_lea.vmem %s34_s28, 512  ;;  %p647_p4 = scmp.lt.s32.totalorder %s34_s28, %s34_s28 }
   0xc   :  { %p643_p3 = scmp.ne.s32.totalorder %s34_s28, %s642_s14  ;;  %p648_p5 = scmp.lt.s32.totalorder %s642_s14, %s642_s14 }
   0xe   :  { %p649_p6 = por %p648_p5, %p647_p4 }
  0x10   :  { %p650_p7 = pnand %p649_p6, %p643_p3 }
  0x12   :  { %653 = shalt.err (!%p650_p7)
}
  0x13   :  { %s819_s15 = smov 64   ;;  %s820_s16 = smov 4  }
  0x14   :  { %39 = dma.hbm_to_vmem [thread:$0]  %s1064_s1, 512, %s34_s28, [#allocation6], %s819_s15, %s819_s15, %s820_s16  }
  0x15   :  { %s821_s19 = smov [#allocation8]   ;;  %s822_s21 = smov [#allocation11]  }
  0x16   :  { %s57_s20 = sshll.u32 %s821_s19, 4  ;;  %s83_s22 = sshll.u32 %s822_s21, 4  ;;  %s58_s20 = int_to_ptr.vmem [resolvable:$true] %s57_s20  ;;  %s84_s22 = int_to_ptr.vmem [resolvable:$true] %s83_s22 }
  0x17   :  { %s654_s25 = scalar_lea.hbm %s1066_s3, 512 }
  0x18   :  { %p655_p8 = scmp.ne.s32.totalorder %s1066_s3, %s654_s25  ;;  %p658_p9 = scmp.lt.u32.totalorder %s654_s25, %s1066_s3 }
  0x1a   :  { %p660_p10 = pnand %p658_p9, %p655_p8 }
  0x1c   :  { %663 = shalt.err (!%p660_p10)
}
  0x1d   :  { %s664_s1 = scalar_lea.vmem %s58_s20, 512  ;;  %p669_p12 = scmp.lt.s32.totalorder %s58_s20, %s58_s20 }
  0x1e   :  { %p665_p11 = scmp.ne.s32.totalorder %s58_s20, %s664_s1  ;;  %p670_p13 = scmp.lt.s32.totalorder %s664_s1, %s664_s1 }
  0x20   :  { %p671_p0 = por %p670_p13, %p669_p12 }
  0x22   :  { %p672_p1 = pnand %p671_p0, %p665_p11 }
  0x24   :  { %675 = shalt.err (!%p672_p1)
}
  0x25   :  { %s823_s28 = smov 128   ;;  %s824_s9 = smov 8  }
  0x26   :  { %63 = dma.hbm_to_vmem [thread:$0]  %s1066_s3, 512, %s58_s20, [#allocation9], %s823_s28, %s823_s28, %s824_s9  }
  0x27   :  { %s676_s14 = scalar_lea.hbm %s1069_s6, 512 }
  0x28   :  { %p677_p2 = scmp.ne.s32.totalorder %s1069_s6, %s676_s14  ;;  %p680_p3 = scmp.lt.u32.totalorder %s676_s14, %s1069_s6 }
  0x2a   :  { %p682_p4 = pnand %p680_p3, %p677_p2 }
  0x2c   :  { %685 = shalt.err (!%p682_p4)
}
  0x2d   :  { %s686_s23 = scalar_lea.vmem %s84_s22, 512  ;;  %p691_p6 = scmp.lt.s32.totalorder %s84_s22, %s84_s22 }
  0x2e   :  { %p687_p5 = scmp.ne.s32.totalorder %s84_s22, %s686_s23  ;;  %p692_p7 = scmp.lt.s32.totalorder %s686_s23, %s686_s23 }
  0x30   :  { %p693_p8 = por %p692_p7, %p691_p6 }
  0x32   :  { %p694_p9 = pnand %p693_p8, %p687_p5 }
  0x34   :  { %697 = shalt.err (!%p694_p9)
}
  0x35   :  { %89 = dma.hbm_to_vmem [thread:$0]  %s1069_s6, 512, %s84_s22, [#allocation12], %s823_s28, %s823_s28, %s824_s9  }
  0x36   :  { %s825_s24 = smov [#allocation2]   ;;  %s826_s26 = smov [#allocation7]  }
  0x37   :  { %s24_s25 = sshll.u32 %s825_s24, 4  ;;  %s45_s27 = sshll.u32 %s826_s26, 4  ;;  %s25_s25 = int_to_ptr.vmem [resolvable:$true] %s24_s25  ;;  %s46_s27 = int_to_ptr.vmem [resolvable:$true] %s45_s27 }
  0x38   :  { %s698_s1 = scalar_lea.hbm %s1063_s0, 128 }
  0x39   :  { %p699_p10 = scmp.ne.s32.totalorder %s1063_s0, %s698_s1  ;;  %p702_p11 = scmp.lt.u32.totalorder %s698_s1, %s1063_s0 }
  0x3b   :  { %p704_p12 = pnand %p702_p11, %p699_p10 }
  0x3d   :  { %707 = shalt.err (!%p704_p12)
}
  0x3e   :  { %s708_s6 = scalar_lea.vmem %s25_s25, 128  ;;  %p713_p0 = scmp.lt.s32.totalorder %s25_s25, %s25_s25 }
  0x3f   :  { %p709_p13 = scmp.ne.s32.totalorder %s25_s25, %s708_s6  ;;  %p714_p1 = scmp.lt.s32.totalorder %s708_s6, %s708_s6 }
  0x41   :  { %p715_p2 = por %p714_p1, %p713_p0 }
  0x43   :  { %p716_p3 = pnand %p715_p2, %p709_p13 }
  0x45   :  { %719 = shalt.err (!%p716_p3)
}
  0x46   :  { %27 = dma.hbm_to_vmem [thread:$0]  %s1063_s0, 128, %s25_s25, [#allocation3]  }
  0x47   :  { %s720_s19 = scalar_lea.hbm %s1065_s2, 512 }
  0x48   :  { %p721_p4 = scmp.ne.s32.totalorder %s1065_s2, %s720_s19  ;;  %p724_p5 = scmp.lt.u32.totalorder %s720_s19, %s1065_s2 }
  0x4a   :  { %p726_p6 = pnand %p724_p5, %p721_p4 }
  0x4c   :  { %729 = shalt.err (!%p726_p6)
}
  0x4d   :  { %s730_s24 = scalar_lea.vmem %s46_s27, 512  ;;  %p735_p8 = scmp.lt.s32.totalorder %s46_s27, %s46_s27 }
  0x4e   :  { %p731_p7 = scmp.ne.s32.totalorder %s46_s27, %s730_s24  ;;  %p736_p9 = scmp.lt.s32.totalorder %s730_s24, %s730_s24 }
  0x50   :  { %p737_p10 = por %p736_p9, %p735_p8 }
  0x52   :  { %p738_p11 = pnand %p737_p10, %p731_p7 }
  0x54   :  { %741 = shalt.err (!%p738_p11)
}
  0x55   :  { %51 = dma.hbm_to_vmem [thread:$0]  %s1065_s2, 512, %s46_s27, [#allocation6], %s823_s28, %s823_s28, %s824_s9  }
  0x56   :  { %s827_s26 = smov [#allocation10]   ;;  %s828_s30 = smov [#allocation13]  }
  0x57   :  { %s71_s29 = sshll.u32 %s827_s26, 4  ;;  %s95_s1 = sshll.u32 %s828_s30, 4  ;;  %s72_s29 = int_to_ptr.vmem [resolvable:$true] %s71_s29  ;;  %s96_s1 = int_to_ptr.vmem [resolvable:$true] %s95_s1 }
  0x58   :  { %s742_s12 = scalar_lea.hbm %s1068_s5, 512 }
  0x59   :  { %p743_p12 = scmp.ne.s32.totalorder %s1068_s5, %s742_s12  ;;  %p746_p13 = scmp.lt.u32.totalorder %s742_s12, %s1068_s5 }
  0x5b   :  { %p748_p0 = pnand %p746_p13, %p743_p12 }
  0x5d   :  { %751 = shalt.err (!%p748_p0)
}
  0x5e   :  { %s752_s2 = scalar_lea.vmem %s72_s29, 512  ;;  %p757_p2 = scmp.lt.s32.totalorder %s72_s29, %s72_s29 }
  0x5f   :  { %p753_p1 = scmp.ne.s32.totalorder %s72_s29, %s752_s2  ;;  %p758_p3 = scmp.lt.s32.totalorder %s752_s2, %s752_s2 }
  0x61   :  { %p759_p4 = por %p758_p3, %p757_p2 }
  0x63   :  { %p760_p5 = pnand %p759_p4, %p753_p1 }
  0x65   :  { %763 = shalt.err (!%p760_p5)
}
  0x66   :  { %77 = dma.hbm_to_vmem [thread:$0]  %s1068_s5, 512, %s72_s29, [#allocation9], %s819_s15, %s819_s15, %s820_s16  }
  0x67   :  { %s764_s21 = scalar_lea.hbm %s1070_s7, 512 }
  0x68   :  { %p765_p6 = scmp.ne.s32.totalorder %s1070_s7, %s764_s21  ;;  %p768_p7 = scmp.lt.u32.totalorder %s764_s21, %s1070_s7 }
  0x6a   :  { %p770_p8 = pnand %p768_p7, %p765_p6 }
  0x6c   :  { %773 = shalt.err (!%p770_p8)
}
  0x6d   :  { %s774_s0 = scalar_lea.vmem %s96_s1, 512  ;;  %p779_p10 = scmp.lt.s32.totalorder %s96_s1, %s96_s1 }
  0x6e   :  { %p775_p9 = scmp.ne.s32.totalorder %s96_s1, %s774_s0  ;;  %p780_p11 = scmp.lt.s32.totalorder %s774_s0, %s774_s0 }
  0x70   :  { %p781_p12 = por %p780_p11, %p779_p10 }
  0x72   :  { %p782_p13 = pnand %p781_p12, %p775_p9 }
  0x74   :  { %785 = shalt.err (!%p782_p13)
}
  0x75   :  { %101 = dma.hbm_to_vmem [thread:$0]  %s1070_s7, 512, %s96_s1, [#allocation12], %s823_s28, %s823_s28, %s824_s9  }
  0x76   :  { %808 = dma.done.wait [#allocation3], 128  }
  0x77   :  { %809 = vsyncadd [#allocation3], 4294967168 }
  0x78   :  { %810 = dma.done.wait [#allocation6], 1024  }
  0x79   :  { %811 = vsyncadd [#allocation6], 4294966272 }
  0x7a   :  { %812 = dma.done.wait [#allocation9], 1024  }
  0x7b   :  { %813 = vsyncadd [#allocation9], 4294966272 }
  0x7c   :  { %814 = dma.done.wait [#allocation12], 1024  }
  0x7d   :  { %815 = vsyncadd [#allocation12], 4294966272  ;;  %v829_v0 = vmov 0.0   ;;  %vm830_vm0 = vmmov 0   ;;  %v190_v1 = vld [vmem:[#allocation7] sm:$0xff]  ;;  %v191_v2 = vld [vmem:[#allocation7 + $0x8] sm:$0xff] }
  0x7e   :  { %584 = vmatprep.subr.bf16.mxu0 %v829_v0  ;;  %592 = vmatprep.subr.bf16.mxu1 %v829_v0  ;;  %v194_v3 = vld [vmem:[#allocation8] sm:$0xff]  ;;  %v207_v4 = vpack.c.bf16 %v191_v2, %v190_v1  ;;  %v195_v5 = vld [vmem:[#allocation8 + $0x8] sm:$0xff]  ;;  %v192_v6 = vld [vmem:[#allocation7 + $0x10] sm:$0xff]  ;;  %vm211_vm1 = vcmask 261120   ;;  %vm133_vm2 = vcmask 257024   ;;  %vm271_vm3 = vcmask 1041409  }
  0x7f   :  { %588 = vmatprep.mubr.msk.bf16.mxu0 %vm830_vm0, %v829_v0  ;;  %596 = vmatprep.mubr.msk.bf16.mxu1 %vm830_vm0, %v829_v0  ;;  %v193_v7 = vld [vmem:[#allocation7 + $0x18] sm:$0xff]  ;;  %v209_v8 = vpack.c.bf16 %v195_v5, %v194_v3  ;;  %v196_v9 = vld [vmem:[#allocation8 + $0x10] sm:$0xff]  ;;  %v404_v13 = vld [vmem:[#allocation11] sm:$0xff]  ;;  %vm273_vm4 = vcmask 1042434   ;;  %vm275_vm5 = vcmask 1043459   ;;  %vm277_vm6 = vcmask 1044484  }
  0x80   :  { %v197_v10 = vld [vmem:[#allocation8 + $0x18] sm:$0xff]  ;;  %585 = vmatpush3.bf16.msra.mxu0 %v207_v4  ;;  %v208_v12 = vpack.c.bf16 %v193_v7, %v192_v6  ;;  %v405_v14 = vld [vmem:[#allocation11 + $0x8] sm:$0xff]  ;;  %v125_v15 = vld [vmem:[#allocation5] sm:$0xf]  ;;  %vm279_vm7 = vcmask 1045509   ;;  %vm281_vm8 = vcmask 1046534  }
  0x81   :  { %v124_v11 = vld [vmem:[#allocation2] sm:$0xff]  ;;  %593 = vmatpush3.bf16.msra.mxu1 %v209_v8  ;;  %586 = vmatprep.subr.bf16.mxu0 %v829_v0  ;;  %v210_v16 = vpack.c.bf16 %v197_v10, %v196_v9  ;;  %v126_v17 = vld [vmem:[#allocation5 + $0x4] sm:$0xf]  ;;  %v127_v18 = vld [vmem:[#allocation5 + $0x8] sm:$0xf]  ;;  %v421_v21 = vpack.c.bf16 %v405_v14, %v404_v13  ;;  %v134_v26 = vsel %vm133_vm2, %v125_v15, 0.0 }
  0x82   :  { %v128_v19 = vld [vmem:[#allocation5 + $0xc] sm:$0xf]  ;;  %594 = vmatprep.subr.bf16.mxu1 %v829_v0  ;;  %v198_v20 = vpack.c.bf16 %v124_v11, %v124_v11  ;;  %v129_v22 = vld [vmem:[#allocation5 + $0x10] sm:$0xf]  ;;  %v130_v23 = vld [vmem:[#allocation5 + $0x14] sm:$0xf] }
  0x83   :  { %v131_v24 = vld [vmem:[#allocation5 + $0x18] sm:$0xf]  ;;  %v132_v25 = vld [vmem:[#allocation5 + $0x1c] sm:$0xf]  ;;  %v141_v27 = vsel %vm133_vm2, %v126_v17, 0.0  ;;  %v148_v28 = vsel %vm133_vm2, %v127_v18, 0.0 }
  0x84   :  { %v155_v29 = vsel %vm133_vm2, %v128_v19, 0.0  ;;  %587 = vmatpush3.bf16.msra.mxu0 %v208_v12  ;;  %v135_v30 = vrot.slane %v134_v26, 4  ;;  %v142_v31 = vrot.slane %v141_v27, 4  ;;  %v149_v32 = vrot.slane %v148_v28, 4  ;;  %v1003_v19 = vld [vmem:[#allocation13] sm:$0xff]  ;;  %s832_s9 = smov 96  }
  0x85   :  { %v156_v33 = vrot.slane %v155_v29, 4  ;;  %595 = vmatpush3.bf16.msra.mxu1 %v210_v16  ;;  %600 = vmatprep.subr.bf16.mxu0 %v829_v0  ;;  %v162_v34 = vsel %vm133_vm2, %v129_v22, 0.0  ;;  %v169_v35 = vsel %vm133_vm2, %v130_v23, 0.0  ;;  %v176_v36 = vsel %vm133_vm2, %v131_v24, 0.0  ;;  %s833_s25 = smov [#allocation14]  }
  0x86   :  { %v183_v37 = vsel %vm133_vm2, %v132_v25, 0.0  ;;  %608 = vmatprep.subr.bf16.mxu1 %v829_v0  ;;  %v136_v38 = vadd.f32 %v135_v30, %v134_v26  ;;  %v143_v39 = vadd.f32 %v142_v31, %v141_v27  ;;  %v150_v40 = vadd.f32 %v149_v32, %v148_v28  ;;  %v407_v26 = vld [vmem:[#allocation11 + $0x18] sm:$0xff]  ;;  %v1007_v27 = vld [vmem:[#allocation13 + $0x10] sm:$0xff]  ;;  %s556_s26 = sshll.u32 %s833_s25, 4  ;;  %s557_s26 = int_to_ptr.vmem [resolvable:$true] %s556_s26 }
  0x87   :  { %v157_v41 = vadd.f32 %v156_v33, %v155_v29  ;;  %589 = vmatmul.mubr.msk.bf16.vlgmr.msra.gmra.mrb[0].mxu0 %vm211_vm1, %v198_v20  ;;  %v163_v42 = vrot.slane %v162_v34, 4  ;;  %v170_v43 = vrot.slane %v169_v35, 4  ;;  %v177_v44 = vrot.slane %v176_v36, 4  ;;  %v1005_v20 = vld [vmem:[#allocation13 + $0x8] sm:$0xff]  ;;  %v1009_v28 = vld [vmem:[#allocation13 + $0x18] sm:$0xff]  ;;  %p791_p1 = scmp.lt.s32.totalorder %s557_s26, %s557_s26 }
  0x88   :  { %v184_v45 = vrot.slane %v183_v37, 4  ;;  %601 = vmatpush3.bf16.msra.mxu0 %v421_v21  ;;  %v137_v46 = vrot.slane %v136_v38, 2  ;;  %v144_v47 = vrot.slane %v143_v39, 2  ;;  %v151_v48 = vrot.slane %v150_v40, 2  ;;  %604 = vmatprep.mubr.msk.bf16.mxu0 %vm830_vm0, %v829_v0  ;;  %v406_v21 = vld [vmem:[#allocation11 + $0x10] sm:$0xff] }
  0x89   :  { %v158_v49 = vrot.slane %v157_v41, 2  ;;  %v164_v50 = vadd.f32 %v163_v42, %v162_v34  ;;  %v171_v51 = vadd.f32 %v170_v43, %v169_v35  ;;  %v178_v52 = vadd.f32 %v177_v44, %v176_v36  ;;  %602 = vmatprep.subr.bf16.mxu0 %v829_v0  ;;  %v342_v44 = vld [vmem:[#allocation10 + $0x8] sm:$0xf] }
  0x8a   :  { %v185_v53 = vadd.f32 %v184_v45, %v183_v37  ;;  %v138_v54 = vadd.f32 %v137_v46, %v136_v38  ;;  %v145_v55 = vadd.f32 %v144_v47, %v143_v39  ;;  %v152_v56 = vadd.f32 %v151_v48, %v150_v40  ;;  %v339_v37 = vld [vmem:[%s1067_s4] sm:$0xff]  ;;  %v340_v38 = vld [vmem:[#allocation10] sm:$0xf]  ;;  %v341_v39 = vld [vmem:[#allocation10 + $0x4] sm:$0xf]  ;;  %s831_s4 = smov 32  }
  0x8b   :  { %v159_v57 = vadd.f32 %v158_v49, %v157_v41  ;;  %v165_v58 = vrot.slane %v164_v50, 2  ;;  %v172_v59 = vrot.slane %v171_v51, 2  ;;  %v179_v60 = vrot.slane %v178_v52, 2  ;;  %v343_v49 = vld [vmem:[#allocation10 + $0xc] sm:$0xf] }
  0x8c   :  { %v186_v61 = vrot.slane %v185_v53, 2  ;;  %v139_v62 = vrot.slane %v138_v54, 1  ;;  %v146_v63 = vrot.slane %v145_v55, 1  ;;  %v153_v1 = vrot.slane %v152_v56, 1 }
  0x8d   :  { %v160_v2 = vrot.slane %v159_v57, 1  ;;  %v166_v3 = vadd.f32 %v165_v58, %v164_v50  ;;  %v173_v4 = vadd.f32 %v172_v59, %v171_v51  ;;  %v180_v5 = vadd.f32 %v179_v60, %v178_v52  ;;  %v344_v50 = vld [vmem:[#allocation10 + $0x10] sm:$0xf] }
  0x8e   :  { %v187_v6 = vadd.f32 %v186_v61, %v185_v53  ;;  %v140_v7 = vadd.f32 %v139_v62, %v138_v54  ;;  %v147_v8 = vadd.f32 %v146_v63, %v145_v55  ;;  %v154_v9 = vadd.f32 %v153_v1, %v152_v56  ;;  %v345_v56 = vld [vmem:[#allocation10 + $0x14] sm:$0xf] }
  0x8f   :  { %v161_v10 = vadd.f32 %v160_v2, %v159_v57  ;;  %v167_v11 = vrot.slane %v166_v3, 1  ;;  %v174_v12 = vrot.slane %v173_v4, 1  ;;  %v181_v13 = vrot.slane %v180_v5, 1 }
  0x90   :  { %v188_v14 = vrot.slane %v187_v6, 1  ;;  %v199_v15 = vpack.c.bf16 %v140_v7, %v140_v7  ;;  %v200_v16 = vpack.c.bf16 %v147_v8, %v147_v8  ;;  %v201_v17 = vpack.c.bf16 %v154_v9, %v154_v9 }
  0x91   :  { %v202_v18 = vpack.c.bf16 %v161_v10, %v161_v10  ;;  %vm283_vm9 = vcmask 1047559   ;;  %v168_v22 = vadd.f32 %v167_v11, %v166_v3  ;;  %v175_v23 = vadd.f32 %v174_v12, %v173_v4 }
  0x92   :  { %v182_v24 = vadd.f32 %v181_v13, %v180_v5  ;;  %v189_v25 = vadd.f32 %v188_v14, %v187_v6  ;;  %v263_v29 = vunpack.c.l.b16 %v199_v15  ;;  %v264_v30 = vunpack.c.l.b16 %v200_v16  ;;  %v346_v6 = vld [vmem:[#allocation10 + $0x18] sm:$0xf]  ;;  %v347_v15 = vld [vmem:[#allocation10 + $0x1c] sm:$0xf] }
  0x93   :  { %v265_v31 = vunpack.c.l.b16 %v201_v17  ;;  %v266_v32 = vunpack.c.l.b16 %v202_v18  ;;  %v203_v33 = vpack.c.bf16 %v168_v22, %v168_v22  ;;  %v204_v34 = vpack.c.bf16 %v175_v23, %v175_v23 }
  0x94   :  { %v205_v35 = vpack.c.bf16 %v182_v24, %v182_v24  ;;  %v206_v36 = vpack.c.bf16 %v189_v25, %v189_v25  ;;  %v272_v40 = vsel %vm271_vm3, %v264_v30, %v263_v29  ;;  %v423_v41 = vpack.c.bf16 %v1005_v20, %v1003_v19 }
  0x95   :  { %v422_v42 = vpack.c.bf16 %v407_v26, %v406_v21  ;;  %v424_v43 = vpack.c.bf16 %v1009_v28, %v1007_v27  ;;  %v267_v45 = vunpack.c.l.b16 %v203_v33  ;;  %v268_v46 = vunpack.c.l.b16 %v204_v34 }
  0x96   :  { %v269_v47 = vunpack.c.l.b16 %v205_v35  ;;  %v270_v48 = vunpack.c.l.b16 %v206_v36  ;;  %v274_v51 = vsel %vm273_vm4, %v265_v31, %v272_v40  ;;  %v412_v52 = vpack.c.bf16 %v339_v37, %v339_v37 }
  0x97   :  { %603 = vmatpush3.bf16.msra.mxu0 %v422_v42  ;;  %v348_v53 = vsel %vm133_vm2, %v340_v38, 0.0  ;;  %v355_v54 = vsel %vm133_vm2, %v341_v39, 0.0  ;;  %v276_v55 = vsel %vm275_vm5, %v266_v32, %v274_v51  ;;  %v362_v59 = vsel %vm133_vm2, %v342_v44, 0.0 }
  0x98   :  { %v349_v57 = vrot.slane %v348_v53, 4  ;;  %v356_v58 = vrot.slane %v355_v54, 4  ;;  %v278_v60 = vsel %vm277_vm6, %v267_v45, %v276_v55  ;;  %v363_v61 = vrot.slane %v362_v59, 4 }
  0x99   :  { %v369_v62 = vsel %vm133_vm2, %v343_v49, 0.0  ;;  %v376_v63 = vsel %vm133_vm2, %v344_v50, 0.0  ;;  %v280_v1 = vsel %vm279_vm7, %v268_v46, %v278_v60  ;;  %v383_v9 = vsel %vm133_vm2, %v345_v56, 0.0 }
  0x9a   :  { %605 = vmatmul.mubr.msk.bf16.vlgmr.msra.gmra.mrb[4].mxu0 %vm211_vm1, %v412_v52  ;;  %v350_v2 = vadd.f32 %v349_v57, %v348_v53  ;;  %v357_v3 = vadd.f32 %v356_v58, %v355_v54  ;;  %v370_v4 = vrot.slane %v369_v62, 4  ;;  %v282_v5 = vsel %vm281_vm8, %v269_v47, %v280_v1 }
  0x9b   :  { %v364_v7 = vadd.f32 %v363_v61, %v362_v59  ;;  %v377_v8 = vrot.slane %v376_v63, 4  ;;  %v284_v10 = vsel %vm283_vm9, %v270_v48, %v282_v5  ;;  %v384_v18 = vrot.slane %v383_v9, 4 }
  0x9c   :  { %v351_v11 = vrot.slane %v350_v2, 2  ;;  %v358_v12 = vrot.slane %v357_v3, 2  ;;  %v371_v13 = vadd.f32 %v370_v4, %v369_v62  ;;  %v285_v14 = vpack.c.b16 %v284_v10, %v284_v10 }
  0x9d   :  { %v365_v16 = vrot.slane %v364_v7, 2  ;;  %v378_v17 = vadd.f32 %v377_v8, %v376_v63  ;;  %v390_v22 = vsel %vm133_vm2, %v346_v6, 0.0  ;;  %v385_v25 = vadd.f32 %v384_v18, %v383_v9 }
  0x9e   :  { %v352_v19 = vadd.f32 %v351_v11, %v350_v2  ;;  %v359_v20 = vadd.f32 %v358_v12, %v357_v3  ;;  %v372_v21 = vrot.slane %v371_v13, 2  ;;  %597 = vmatmul.mubr.msk.bf16.vlgmr.msra.gmra.mrb[0].mxu1 %vm211_vm1, %v285_v14  ;;  %v391_v26 = vrot.slane %v390_v22, 4 }
  0x9f   :  { %v366_v23 = vadd.f32 %v365_v16, %v364_v7  ;;  %v379_v24 = vrot.slane %v378_v17, 2  ;;  %609 = vmatpush3.bf16.msra.mxu1 %v423_v41  ;;  %612 = vmatprep.mubr.msk.bf16.mxu1 %vm830_vm0, %v829_v0  ;;  %v397_v32 = vsel %vm133_vm2, %v347_v15, 0.0  ;;  %v386_v35 = vrot.slane %v385_v25, 2 }
  0xa0   :  { %v353_v29 = vrot.slane %v352_v19, 1  ;;  %v360_v30 = vrot.slane %v359_v20, 1  ;;  %v373_v31 = vadd.f32 %v372_v21, %v371_v13  ;;  %610 = vmatprep.subr.bf16.mxu1 %v829_v0  ;;  %v392_v36 = vadd.f32 %v391_v26, %v390_v22 }
  0xa1   :  { %v367_v33 = vrot.slane %v366_v23, 1  ;;  %v380_v34 = vadd.f32 %v379_v24, %v378_v17  ;;  %v398_v40 = vrot.slane %v397_v32, 4  ;;  %v387_v44 = vadd.f32 %v386_v35, %v385_v25 }
  0xa2   :  { %v354_v37 = vadd.f32 %v353_v29, %v352_v19  ;;  %v361_v38 = vadd.f32 %v360_v30, %v359_v20  ;;  %v374_v39 = vrot.slane %v373_v31, 1  ;;  %v393_v45 = vrot.slane %v392_v36, 2 }
  0xa3   :  { %v368_v42 = vadd.f32 %v367_v33, %v366_v23  ;;  %v381_v41 = vrot.slane %v380_v34, 1  ;;  %611 = vmatpush3.bf16.msra.mxu1 %v424_v43  ;;  %v399_v47 = vadd.f32 %v398_v40, %v397_v32  ;;  %v388_v50 = vrot.slane %v387_v44, 1 }
  0xa4   :  { %v375_v46 = vadd.f32 %v374_v39, %v373_v31  ;;  %v413_v48 = vpack.c.bf16 %v354_v37, %v354_v37  ;;  %v414_v0 = vpack.c.bf16 %v361_v38, %v361_v38  ;;  %v394_v51 = vadd.f32 %v393_v45, %v392_v36 }
  0xa5   :  { %v382_v49 = vadd.f32 %v381_v41, %v380_v34  ;;  %v415_v52 = vpack.c.bf16 %v368_v42, %v368_v42  ;;  %v400_v53 = vrot.slane %v399_v47, 2  ;;  %v389_v57 = vadd.f32 %v388_v50, %v387_v44 }
  0xa6   :  { %v416_v54 = vpack.c.bf16 %v375_v46, %v375_v46  ;;  %v476_v55 = vunpack.c.l.b16 %v413_v48  ;;  %v477_v56 = vunpack.c.l.b16 %v414_v0  ;;  %v395_v58 = vrot.slane %v394_v51, 1 }
  0xa7   :  { %v417_v59 = vpack.c.bf16 %v382_v49, %v382_v49  ;;  %v478_v60 = vunpack.c.l.b16 %v415_v52  ;;  %v401_v61 = vadd.f32 %v400_v53, %v399_v47  ;;  %v418_v43 = vpack.c.bf16 %v389_v57, %v389_v57 }
  0xa8   :  { %v479_v62 = vunpack.c.l.b16 %v416_v54  ;;  %v484_v27 = vsel %vm271_vm3, %v477_v56, %v476_v55  ;;  %v396_v28 = vadd.f32 %v395_v58, %v394_v51  ;;  %vm337_vm10 = vcmask 523520  }
  0xa9   :  { %v480_v63 = vunpack.c.l.b16 %v417_v59  ;;  %v485_v1 = vsel %vm273_vm4, %v478_v60, %v484_v27  ;;  %v402_v2 = vrot.slane %v401_v61, 1  ;;  %v481_v5 = vunpack.c.l.b16 %v418_v43 }
  0xaa   :  { %v486_v3 = vsel %vm275_vm5, %v479_v62, %v485_v1  ;;  %v419_v4 = vpack.c.bf16 %v396_v28, %v396_v28  ;;  %vm541_vm11 = vcmask 785920   ;;  %vm548_vm12 = vcmask 1048320  }
  0xab   :  { %v487_v6 = vsel %vm277_vm6, %v480_v63, %v486_v3  ;;  %v403_v7 = vadd.f32 %v402_v2, %v401_v61 }
  0xac   :  { %v482_v8 = vunpack.c.l.b16 %v419_v4  ;;  %v488_v9 = vsel %vm279_vm7, %v481_v5, %v487_v6 }
  0xad   :  { %v420_v10 = vpack.c.bf16 %v403_v7, %v403_v7 }
  0xae   :  { %v489_v11 = vsel %vm281_vm8, %v482_v8, %v488_v9 }
  0xaf   :  { %v483_v12 = vunpack.c.l.b16 %v420_v10 }
  0xb1   :  { %v490_v13 = vsel %vm283_vm9, %v483_v12, %v489_v11 }
  0xb2   :  { %v491_v14 = vpack.c.b16 %v490_v13, %v490_v13 }
  0xb4   :  { %613 = vmatmul.mubr.msk.bf16.vlgmr.msra.gmra.mrb[4].mxu1 %vm211_vm1, %v491_v14 }
 0x15a   :  { %v249_v15 = vpop.f32.mrb[0].mxu0 }
 0x15b   :  { %v330_v16 = vmax.f32 %v249_v15, 0.0  ;;  %v590_v17 = vpop.f32.mrb[1].mxu0 }
 0x15c   :  { %v252_v18 = vpop.f32.mrb[2].mxu0 }
 0x15d   :  { %331 = vst.msk [vmem:[#allocation14] sm:$0xff] %vm211_vm1, %v330_v16  ;;  %v591_v19 = vpop.f32.mrb[3].mxu0 }
 0x16d   :  { %v462_v20 = vpop.f32.mrb[4].mxu0 }
 0x16e   :  { %v606_v21 = vpop.f32.mrb[5].mxu0  ;;  %v536_v32 = vmax.f32 %v462_v20, 0.0 }
 0x16f   :  { %v465_v22 = vpop.f32.mrb[6].mxu0 }
 0x170   :  { %v607_v23 = vpop.f32.mrb[7].mxu0 }
 0x171   :  { %v323_v24 = vpop.f32.mrb[0].mxu1 }
 0x172   :  { %v329_v25 = vmul.f32 0.25, %v323_v24  ;;  %v598_v26 = vpop.f32.mrb[1].mxu1 }
 0x173   :  { %v326_v29 = vpop.f32.mrb[2].mxu1 }
 0x174   :  { %v332_v30 = vmax.f32 %v329_v25, 0.0  ;;  %v599_v31 = vpop.f32.mrb[3].mxu1 }
 0x176   :  { %334 = vrot.lane.b32.xlu0 %v332_v30, %s831_s4 }
 0x17a   :  { %538 = vrot.lane.b32.xlu0 %v536_v32, %s819_s15  ;;  %s786_s15 = scalar_lea.vmem %s557_s26, 128 }
 0x17b   :  { %p787_p0 = scmp.ne.s32.totalorder %s557_s26, %s786_s15  ;;  %p792_p2 = scmp.lt.s32.totalorder %s786_s15, %s786_s15 }
 0x17d   :  { %p793_p3 = por %p792_p2, %p791_p1 }
 0x17f   :  { %p794_p4 = pnand %p793_p3, %p787_p0 }
 0x187   :  { %v529_v33 = vpop.f32.mrb[4].mxu1 }
 0x188   :  { %v535_v34 = vmul.f32 0.25, %v529_v33  ;;  %v614_v35 = vpop.f32.mrb[5].mxu1 }
 0x189   :  { %v532_v36 = vpop.f32.mrb[6].mxu1 }
 0x18a   :  { %v543_v37 = vmax.f32 %v535_v34, 0.0  ;;  %v615_v38 = vpop.f32.mrb[7].mxu1 }
 0x18c   :  { %545 = vrot.lane.b32.xlu1 %v543_v37, %s832_s9 }
 0x1e8   :  { %v335_v39 = vpop.permute.xlu0 %334 }
 0x1e9   :  { %338 = vst.msk [vmem:[#allocation14] sm:$0xff] %vm337_vm10, %v335_v39 }
 0x1ec   :  { %v539_v40 = vpop.permute.xlu0 %538 }
 0x1ed   :  { %542 = vst.msk [vmem:[#allocation14] sm:$0xff] %vm541_vm11, %v539_v40 }
 0x1fe   :  { %v546_v42 = vpop.permute.xlu1 %545 }
 0x1ff   :  { %549 = vst.msk [vmem:[#allocation14] sm:$0xff] %vm548_vm12, %v546_v42 }
 0x200   :  { %797 = shalt.err (!%p794_p4)
}
 0x201   :  { %s798_s1 = scalar_lea.hbm %s1071_s8, 128 }
 0x202   :  { %p799_p5 = scmp.ne.s32.totalorder %s1071_s8, %s798_s1  ;;  %p802_p6 = scmp.lt.u32.totalorder %s798_s1, %s1071_s8 }
 0x204   :  { %p804_p7 = pnand %p802_p6, %p799_p5 }
 0x206   :  { %807 = shalt.err (!%p804_p7)
}
 0x207   :  { %559 = dma.vmem_to_hbm [thread:$0]  %s557_s26, 128, %s1071_s8, [#allocation4]  }
 0x208   :  { %816 = dma.done.wait [#allocation4], 128  }
 0x209   :  { %817 = vsyncadd [#allocation4], 4294967168 }
 0x20a   :  { %563 = vsyncpa [#allocation3], 1 }
 0x20b   :  { %564 = vsyncpa [#allocation6], 1 }
 0x20c   :  { %565 = vsyncpa [#allocation9], 1 }
 0x20d   :  { %566 = vsyncpa [#allocation12], 1 }
 0x20e   :  { %567 = vsyncpa [#allocation4], 1 }

</bundles_post_ra>
